<compile_context>
chip_gen: v6e
topology: v6e:2x2x1
jax: 0.10.0
libtpu: 0.0.40
codegen_flags: <defaults>
</compile_context>

<pallas_src>
import jax
import jax.numpy as jnp
from jax.experimental import pallas as pl
from jax.experimental.pallas import tpu as pltpu


def _round_up(n, m):
    return ((n + m - 1) // m) * m


def _num_tensorcores():
    """Best-effort TensorCores-per-chip (v7x has 2; v5e/v6e have 1)."""
    try:
        kind = jax.devices()[0].device_kind.lower()
        if "v7" in kind or "7x" in kind:
            return 2
    except Exception:
        pass
    return 1


def mlp_kernel(x_ref, w1_ref, b1_ref, w2_ref, b2_ref, w3_ref, b3_ref, o_ref):
    # x_ref : (TB, d_in) f32 batch tile; cast to the matmul dtype in-kernel.
    # w*_ref: full weight matrices (bf16), resident across all grid steps.
    # b*_ref: (1, d) f32 biases (broadcast along sublanes).
    x = x_ref[...].astype(w1_ref.dtype)
    h1 = jnp.dot(x, w1_ref[...], preferred_element_type=jnp.float32) + b1_ref[...]
    h1 = jnp.maximum(h1, 0.0)  # bias-add / ReLU kept in f32 (v5e VPU has no bf16 path)
    h2 = jnp.dot(h1.astype(w2_ref.dtype), w2_ref[...],
                 preferred_element_type=jnp.float32) + b2_ref[...]
    h2 = jnp.maximum(h2, 0.0)
    out = jnp.dot(h2.astype(w3_ref.dtype), w3_ref[...],
                  preferred_element_type=jnp.float32) + b3_ref[...]
    o_ref[...] = out.astype(o_ref.dtype)


def prepare_params(params, matmul_dtype=jnp.bfloat16):
    """One-time parameter prep, hoisted out of the per-call forward path."""
    w1, b1, w2, b2, w3, b3 = params
    return (
        w1.astype(matmul_dtype), b1.reshape(1, -1).astype(jnp.float32),
        w2.astype(matmul_dtype), b2.reshape(1, -1).astype(jnp.float32),
        w3.astype(matmul_dtype), b3.reshape(1, -1).astype(jnp.float32),
    )


def coolmodel_forward(x, prepared_params, *, max_tile_b=2048, num_tc=None):
    """Fused 3-layer MLP forward. x: (B, d_in) f32. Returns (B, d_out) f32."""
    w1, b1, w2, b2, w3, b3 = prepared_params
    B, d_in = x.shape
    hidden = w1.shape[1]
    d_out = w3.shape[1]
    if num_tc is None:
        num_tc = _num_tensorcores()

    # --- Batch tiling ---------------------------------------------------------
    if B <= max_tile_b:
        if num_tc >= 2 and B >= 512:
            # v7x: guarantee >= 2 grid steps so ("parallel",) shards across TCs.
            tile_b = _round_up(pl.cdiv(B, num_tc), 16)
        else:
            # Single big tile; block == full array dim, so any B is legal and
            # no batch padding is needed.  On 1-TC chips extra grid steps are
            # pure per-step overhead.
            tile_b = B
    else:
        tile_b = max_tile_b  # ~5 MB/step VMEM at 2048 rows; fits all generations.
    grid = (pl.cdiv(B, tile_b),)
    # Ragged last tile (if any): Pallas masks out-of-bounds output stores, and
    # garbage rows read past the end of x only feed rows that are masked off.

    x_spec = pl.BlockSpec((tile_b, d_in), lambda i: (i, 0))
    o_spec = pl.BlockSpec((tile_b, d_out), lambda i: (i, 0))
    # Full (constant-index) weight / bias blocks, resident across batch tiles.
    full2d = lambda shape: pl.BlockSpec(shape, lambda i: (0, 0))

    # Advisory cost so XLA schedules the fused custom call sensibly.
    flops = 2 * B * (d_in * hidden + hidden * hidden + hidden * d_out)
    bytes_accessed = (
        B * d_in * 4                                                 # x (f32)
        + (w1.size + w2.size + w3.size) * jnp.dtype(w1.dtype).itemsize
        + (b1.size + b2.size + b3.size) * 4                          # biases
        + B * d_out * 4                                              # out (f32)
    )
    cost = pl.CostEstimate(flops=flops, transcendentals=0,
                           bytes_accessed=bytes_accessed)

    return pl.pallas_call(
        mlp_kernel,
        out_shape=jax.ShapeDtypeStruct((B, d_out), jnp.float32),
        grid_spec=pltpu.PrefetchScalarGridSpec(
            num_scalar_prefetch=0,
            grid=grid,
            in_specs=[
                x_spec,
                full2d(w1.shape), full2d(b1.shape),
                full2d(w2.shape), full2d(b2.shape),
                full2d(w3.shape), full2d(b3.shape),
            ],
            out_specs=o_spec,
        ),
        compiler_params=pltpu.CompilerParams(
            dimension_semantics=("parallel",),
        ),
        cost_estimate=cost,
    )(x, w1, b1, w2, b2, w3, b3)


def init_params(key, input_dim, output_dim, hidden=128, dtype=jnp.float32):
    # Deterministic init mimicking nn.Linear default (uniform +/- 1/sqrt(fan_in)).
    ks = jax.random.split(key, 6)

    def lin(kw, kb, fan_in, fan_out):
        bound = 1.0 / jnp.sqrt(fan_in)
        w = jax.random.uniform(kw, (fan_in, fan_out), dtype, -bound, bound)
        b = jax.random.uniform(kb, (fan_out,), dtype, -bound, bound)
        return w, b

    w1, b1 = lin(ks[0], ks[1], input_dim, hidden)
    w2, b2 = lin(ks[2], ks[3], hidden, hidden)
    w3, b3 = lin(ks[4], ks[5], hidden, output_dim)
    return (w1, b1, w2, b2, w3, b3)


if __name__ == "__main__":
    key = jax.random.PRNGKey(0)
    k_x, k_p = jax.random.split(key)

    batch, input_dim, output_dim = 16, 64, 32
    x = jax.random.normal(k_x, (batch, input_dim), dtype=jnp.float32)
    params = init_params(k_p, input_dim, output_dim)

    # Parameter prep happens once, outside the forward path.
    prepared = prepare_params(params)

    fwd = jax.jit(coolmodel_forward)
    out = fwd(x, prepared)
    jax.block_until_ready(out)

    # Pure-JAX f32 reference of the same semantics (kernel uses bf16 matmul
    # operands with f32 accumulation, so compare with a relaxed tolerance).
    w1, b1, w2, b2, w3, b3 = params
    ref = jnp.maximum(x @ w1 + b1, 0.0)
    ref = jnp.maximum(ref @ w2 + b2, 0.0)
    ref = ref @ w3 + b3

    assert out.shape == (batch, output_dim)
    assert jnp.allclose(out, ref, atol=5e-2, rtol=5e-2), (
        f"max abs err {jnp.max(jnp.abs(out - ref))}")

    print("KERNEL_OK")
</pallas_src>

<mosaic_0001>
module attributes {stable_mosaic.version = 11 : i64} {
  func.func @mlp_kernel(%arg0: i32, %arg1: memref<16x64xf32, #tpu.memory_space<vmem>>, %arg2: memref<64x128xbf16, #tpu.memory_space<vmem>>, %arg3: memref<1x128xf32, #tpu.memory_space<vmem>>, %arg4: memref<128x128xbf16, #tpu.memory_space<vmem>>, %arg5: memref<1x128xf32, #tpu.memory_space<vmem>>, %arg6: memref<128x32xbf16, #tpu.memory_space<vmem>>, %arg7: memref<1x32xf32, #tpu.memory_space<vmem>>, %arg8: memref<16x32xf32, #tpu.memory_space<vmem>>) attributes {dimension_semantics = [#tpu.dimension_semantics<parallel>], iteration_bounds = array<i64: 1>, scalar_prefetch = 0 : i64, scratch_operands = 0 : i64, tpu.core_type = #tpu.core_type<tc>, window_params = [{transform_indices = @transform_0, window_bounds = array<i64: 16, 64>}, {pipeline_mode = #tpu.pipeline_mode<synchronous>, transform_indices = @transform_1, window_bounds = array<i64: 64, 128>}, {pipeline_mode = #tpu.pipeline_mode<synchronous>, transform_indices = @transform_2, window_bounds = array<i64: 1, 128>}, {pipeline_mode = #tpu.pipeline_mode<synchronous>, transform_indices = @transform_3, window_bounds = array<i64: 128, 128>}, {pipeline_mode = #tpu.pipeline_mode<synchronous>, transform_indices = @transform_4, window_bounds = array<i64: 1, 128>}, {pipeline_mode = #tpu.pipeline_mode<synchronous>, transform_indices = @transform_5, window_bounds = array<i64: 128, 32>}, {pipeline_mode = #tpu.pipeline_mode<synchronous>, transform_indices = @transform_6, window_bounds = array<i64: 1, 32>}, {transform_indices = @transform_7, window_bounds = array<i64: 16, 32>}]} {
    %c0 = arith.constant 0 : index
    %c0_0 = arith.constant 0 : index
    %0 = vector.load %arg1[%c0, %c0_0] : memref<16x64xf32, #tpu.memory_space<vmem>>, vector<16x64xf32>
    %1 = arith.truncf %0 : vector<16x64xf32> to vector<16x64xbf16>
    %c0_1 = arith.constant 0 : index
    %c0_2 = arith.constant 0 : index
    %2 = vector.load %arg2[%c0_1, %c0_2] : memref<64x128xbf16, #tpu.memory_space<vmem>>, vector<64x128xbf16>
    %cst = arith.constant dense<0.000000e+00> : vector<16x128xf32>
    %3 = tpu.matmul %1, %2, %cst {dimension_numbers = #tpu.dot_dimension_numbers<[1], [0], [0], [1], [0, 0, 1, 1], [], []>} : vector<16x64xbf16>, vector<64x128xbf16>, vector<16x128xf32> -> vector<16x128xf32>
    %c0_3 = arith.constant 0 : index
    %c0_4 = arith.constant 0 : index
    %4 = vector.load %arg3[%c0_3, %c0_4] : memref<1x128xf32, #tpu.memory_space<vmem>>, vector<1x128xf32>
    %5 = vector.broadcast %4 : vector<1x128xf32> to vector<16x128xf32>
    %6 = arith.addf %3, %5 : vector<16x128xf32>
    %cst_5 = arith.constant 0.000000e+00 : f32
    %7 = vector.broadcast %cst_5 : f32 to vector<16x128xf32>
    %8 = arith.maximumf %6, %7 : vector<16x128xf32>
    %9 = arith.truncf %8 : vector<16x128xf32> to vector<16x128xbf16>
    %c0_6 = arith.constant 0 : index
    %c0_7 = arith.constant 0 : index
    %10 = vector.load %arg4[%c0_6, %c0_7] : memref<128x128xbf16, #tpu.memory_space<vmem>>, vector<128x128xbf16>
    %cst_8 = arith.constant dense<0.000000e+00> : vector<16x128xf32>
    %11 = tpu.matmul %9, %10, %cst_8 {dimension_numbers = #tpu.dot_dimension_numbers<[1], [0], [0], [1], [0, 0, 1, 1], [], []>} : vector<16x128xbf16>, vector<128x128xbf16>, vector<16x128xf32> -> vector<16x128xf32>
    %c0_9 = arith.constant 0 : index
    %c0_10 = arith.constant 0 : index
    %12 = vector.load %arg5[%c0_9, %c0_10] : memref<1x128xf32, #tpu.memory_space<vmem>>, vector<1x128xf32>
    %13 = vector.broadcast %12 : vector<1x128xf32> to vector<16x128xf32>
    %14 = arith.addf %11, %13 : vector<16x128xf32>
    %cst_11 = arith.constant 0.000000e+00 : f32
    %15 = vector.broadcast %cst_11 : f32 to vector<16x128xf32>
    %16 = arith.maximumf %14, %15 : vector<16x128xf32>
    %17 = arith.truncf %16 : vector<16x128xf32> to vector<16x128xbf16>
    %c0_12 = arith.constant 0 : index
    %c0_13 = arith.constant 0 : index
    %18 = vector.load %arg6[%c0_12, %c0_13] : memref<128x32xbf16, #tpu.memory_space<vmem>>, vector<128x32xbf16>
    %cst_14 = arith.constant dense<0.000000e+00> : vector<16x32xf32>
    %19 = tpu.matmul %17, %18, %cst_14 {dimension_numbers = #tpu.dot_dimension_numbers<[1], [0], [0], [1], [0, 0, 1, 1], [], []>} : vector<16x128xbf16>, vector<128x32xbf16>, vector<16x32xf32> -> vector<16x32xf32>
    %c0_15 = arith.constant 0 : index
    %c0_16 = arith.constant 0 : index
    %20 = vector.load %arg7[%c0_15, %c0_16] : memref<1x32xf32, #tpu.memory_space<vmem>>, vector<1x32xf32>
    %21 = vector.broadcast %20 : vector<1x32xf32> to vector<16x32xf32>
    %22 = arith.addf %19, %21 : vector<16x32xf32>
    %c0_17 = arith.constant 0 : index
    %c0_18 = arith.constant 0 : index
    %23 = vector.load %arg8[%c0_17, %c0_18] : memref<16x32xf32, #tpu.memory_space<vmem>>, vector<16x32xf32>
    tpu.vector_store %arg8[%c0_17, %c0_18], %22 {strides = array<i32>} : memref<16x32xf32, #tpu.memory_space<vmem>>, vector<16x32xf32>,
    return
  }
  func.func @transform_0(%arg0: i32) -> (i32, i32) {
    %c0_i32 = arith.constant 0 : i32
    %c0_i32_0 = arith.constant 0 : i32
    return %arg0, %c0_i32 : i32, i32
  }
  func.func @transform_1(%arg0: i32) -> (i32, i32) {
    %c0_i32 = arith.constant 0 : i32
    %c0_i32_0 = arith.constant 0 : i32
    %c0_i32_1 = arith.constant 0 : i32
    return %c0_i32, %c0_i32_0 : i32, i32
  }
  func.func @transform_2(%arg0: i32) -> (i32, i32) {
    %c0_i32 = arith.constant 0 : i32
    %c0_i32_0 = arith.constant 0 : i32
    %c0_i32_1 = arith.constant 0 : i32
    return %c0_i32, %c0_i32_0 : i32, i32
  }
  func.func @transform_3(%arg0: i32) -> (i32, i32) {
    %c0_i32 = arith.constant 0 : i32
    %c0_i32_0 = arith.constant 0 : i32
    %c0_i32_1 = arith.constant 0 : i32
    return %c0_i32, %c0_i32_0 : i32, i32
  }
  func.func @transform_4(%arg0: i32) -> (i32, i32) {
    %c0_i32 = arith.constant 0 : i32
    %c0_i32_0 = arith.constant 0 : i32
    %c0_i32_1 = arith.constant 0 : i32
    return %c0_i32, %c0_i32_0 : i32, i32
  }
  func.func @transform_5(%arg0: i32) -> (i32, i32) {
    %c0_i32 = arith.constant 0 : i32
    %c0_i32_0 = arith.constant 0 : i32
    %c0_i32_1 = arith.constant 0 : i32
    return %c0_i32, %c0_i32_0 : i32, i32
  }
  func.func @transform_6(%arg0: i32) -> (i32, i32) {
    %c0_i32 = arith.constant 0 : i32
    %c0_i32_0 = arith.constant 0 : i32
    %c0_i32_1 = arith.constant 0 : i32
    return %c0_i32, %c0_i32_0 : i32, i32
  }
  func.func @transform_7(%arg0: i32) -> (i32, i32) {
    %c0_i32 = arith.constant 0 : i32
    %c0_i32_0 = arith.constant 0 : i32
    return %arg0, %c0_i32 : i32, i32
  }
}

</mosaic_0001>

<bundles_post_ra>
// kernel: coolmodel_forward.1
= control target key start
LH: loop header
LB: loop body
LE: loop exit
PB: predicated region body
PF: predicated region fallthrough
CT: control target
= control target key end

     0   :  { %12 = vsyncpa [#allocation3], 0  ;;  %s693_s0 = inlined_call_operand.vmem [shape: f32[16,64], index: 0, kind: input, shape index: {}]   ;;  %s694_s1 = inlined_call_operand.hbm [shape: bf16[64,128], index: 1, kind: input, shape index: {}]   ;;  %s695_s2 = inlined_call_operand.vmem [shape: f32[1,128], index: 2, kind: input, shape index: {}]   ;;  %s696_s3 = inlined_call_operand.vmem [shape: bf16[128,128], index: 3, kind: input, shape index: {}]   ;;  %s697_s4 = inlined_call_operand.vmem [shape: f32[1,128], index: 4, kind: input, shape index: {}]   ;;  %s698_s5 = inlined_call_operand.vmem [shape: bf16[128,32], index: 5, kind: input, shape index: {}]   ;;  %s699_s6 = inlined_call_operand.vmem [shape: f32[1,32], index: 6, kind: input, shape index: {}]   ;;  %s700_s7 = inlined_call_operand.hbm [shape: f32[16,32], index: 7, kind: output, shape index: {}]  }
   0x1   :  { %13 = vsyncpa [#allocation4], 0  ;;  %s550_s24 = smov [#allocation2]  }
   0x2   :  { %s21_s25 = sshll.u32 %s550_s24, 4  ;;  %s22_s25 = int_to_ptr.vmem [resolvable:$true] %s21_s25 }
   0x3   :  { %s514_s26 = scalar_lea.vmem %s22_s25, 512  ;;  %p519_p1 = scmp.lt.s32.totalorder %s22_s25, %s22_s25 }
   0x4   :  { %p515_p0 = scmp.ne.s32.totalorder %s22_s25, %s514_s26  ;;  %p520_p2 = scmp.lt.s32.totalorder %s514_s26, %s514_s26 }
   0x6   :  { %p521_p3 = por %p520_p2, %p519_p1 }
   0x8   :  { %p522_p4 = pnand %p521_p3, %p515_p0 }
   0xa   :  { %525 = shalt.err (!%p522_p4)
}
   0xb   :  { %s551_s27 = smov 64   ;;  %s552_s28 = smov 4  }
   0xc   :  { %27 = dma.hbm_to_vmem [thread:$0]  %s694_s1, 512, %s22_s25, [#allocation3], %s551_s27, %s551_s27, %s552_s28  }
   0xd   :  { %546 = dma.done.wait [#allocation3], 512  }
   0xe   :  { %547 = vsyncadd [#allocation3], 4294966784  ;;  %v553_v0 = vmov 0.0   ;;  %vm554_vm0 = vmmov 0   ;;  %v486_v1 = vld [vmem:[#allocation2 + $0x18] sm:$0xff]   ;;  %v487_v2 = vld [vmem:[#allocation2 + $0x10] sm:$0xff]  }
   0xf   :  { %426 = vmatprep.subr.bf16.mxu0 %v553_v0  ;;  %434 = vmatprep.mubr.msk.bf16.mxu0 %vm554_vm0, %v553_v0  ;;  %v490_v3 = vld [vmem:[%s696_s3 + $0x38] sm:$0xff]   ;;  %v488_v4 = vld [vmem:[#allocation2 + $0x8] sm:$0xff]   ;;  %v491_v5 = vld [vmem:[%s696_s3 + $0x30] sm:$0xff]   ;;  %vm84_vm1 = vcmask 523264   ;;  %vm359_vm2 = vcmask 261120  }
  0x10   :  { %438 = vmatprep.subr.bf16.mxu1 %v553_v0  ;;  %454 = vmatprep.mubr.msk.bf16.mxu1 %vm554_vm0, %v553_v0  ;;  %v489_v6 = vld [vmem:[#allocation2] sm:$0xff]   ;;  %v43_v8 = vld [vmem:[%s693_s0 + $0x8] sm:$0xff]  ;;  %v494_v12 = vld [vmem:[%s696_s3 + $0x18] sm:$0xff]  }
  0x11   :  { %427 = vmatpush3.bf16.msra.mxu0 %v486_v1  ;;  %439 = vmatpush3.bf16.msra.mxu1 %v490_v3  ;;  %v42_v7 = vld [vmem:[%s693_s0] sm:$0xff]  ;;  %v492_v9 = vld [vmem:[%s696_s3 + $0x28] sm:$0xff]   ;;  %v495_v13 = vld [vmem:[%s696_s3 + $0x10] sm:$0xff]  }
  0x12   :  { %428 = vmatprep.subr.bf16.mxu0 %v553_v0  ;;  %440 = vmatprep.subr.bf16.mxu1 %v553_v0  ;;  %v44_v10 = vpack.c.bf16 %v43_v8, %v42_v7  ;;  %v493_v11 = vld [vmem:[%s696_s3 + $0x20] sm:$0xff]   ;;  %v496_v14 = vld [vmem:[%s696_s3 + $0x8] sm:$0xff]   ;;  %v498_v16 = vld [vmem:[%s698_s5 + $0x38] sm:$0xff]  }
  0x13   :  { %v497_v15 = vld [vmem:[%s696_s3] sm:$0xff]   ;;  %v499_v17 = vld [vmem:[%s698_s5 + $0x30] sm:$0xff]   ;;  %v500_v18 = vld [vmem:[%s698_s5 + $0x28] sm:$0xff]  }
  0x14   :  { %v501_v19 = vld [vmem:[%s698_s5 + $0x20] sm:$0xff]   ;;  %v502_v20 = vld [vmem:[%s698_s5 + $0x18] sm:$0xff]   ;;  %v503_v31 = vld [vmem:[%s698_s5 + $0x10] sm:$0xff]  }
  0x15   :  { %429 = vmatpush3.bf16.msra.mxu0 %v487_v2  ;;  %441 = vmatpush3.bf16.msra.mxu1 %v491_v5  ;;  %v379_v21 = vld [vmem:[%s695_s2] ss:$0 sm:$0xff]  ;;  %v504_v32 = vld [vmem:[%s698_s5 + $0x8] sm:$0xff]  }
  0x16   :  { %430 = vmatprep.subr.bf16.mxu0 %v553_v0  ;;  %442 = vmatprep.subr.bf16.mxu1 %v553_v0  ;;  %v505_v33 = vld [vmem:[%s698_s5] sm:$0xff]   ;;  %s555_s5 = smov [#allocation5]  }
  0x17   :  { %v385_v34 = vld [vmem:[%s697_s4] ss:$0 sm:$0xff]  ;;  %s367_s21 = sshll.u32 %s555_s5, 4  ;;  %s368_s21 = int_to_ptr.vmem [resolvable:$true] %s367_s21 }
  0x18   :  { %v394_v44 = vld [vmem:[%s699_s6] ss:$0 sm:$0xff]  ;;  %s526_s4 = scalar_lea.vmem %s368_s21, 256  ;;  %p531_p6 = scmp.lt.s32.totalorder %s368_s21, %s368_s21 }
  0x19   :  { %431 = vmatpush3.bf16.msra.mxu0 %v488_v4  ;;  %443 = vmatpush3.bf16.msra.mxu1 %v492_v9  ;;  %p527_p5 = scmp.ne.s32.totalorder %s368_s21, %s526_s4  ;;  %p532_p7 = scmp.lt.s32.totalorder %s526_s4, %s526_s4 }
  0x1a   :  { %432 = vmatprep.subr.bf16.mxu0 %v553_v0  ;;  %444 = vmatprep.subr.bf16.mxu1 %v553_v0 }
  0x1b   :  { %p533_p8 = por %p532_p7, %p531_p6 }
  0x1d   :  { %433 = vmatpush3.bf16.msra.mxu0 %v489_v6  ;;  %445 = vmatpush3.bf16.msra.mxu1 %v493_v11  ;;  %p534_p9 = pnand %p533_p8, %p527_p5 }
  0x1e   :  { %458 = vmatprep.subr.bf16.mxu0 %v553_v0  ;;  %446 = vmatprep.subr.bf16.mxu1 %v553_v0 }
  0x20   :  { %435 = vmatmul.mubr.msk.bf16.vlgmr.msra.gmra.mxu0 %vm84_vm1, %v44_v10 }
  0x21   :  { %474 = vmatprep.mubr.msk.bf16.mxu0 %vm554_vm0, %v553_v0  ;;  %447 = vmatpush3.bf16.msra.mxu1 %v494_v12 }
  0x22   :  { %448 = vmatprep.subr.bf16.mxu1 %v553_v0  ;;  %459 = vmatpush3.bf16.msra.mxu0 %v498_v16 }
  0x23   :  { %460 = vmatprep.subr.bf16.mxu0 %v553_v0 }
  0x25   :  { %449 = vmatpush3.bf16.msra.mxu1 %v495_v13 }
  0x26   :  { %450 = vmatprep.subr.bf16.mxu1 %v553_v0  ;;  %461 = vmatpush3.bf16.msra.mxu0 %v499_v17 }
  0x27   :  { %462 = vmatprep.subr.bf16.mxu0 %v553_v0 }
  0x29   :  { %451 = vmatpush3.bf16.msra.mxu1 %v496_v14 }
  0x2a   :  { %452 = vmatprep.subr.bf16.mxu1 %v553_v0  ;;  %463 = vmatpush3.bf16.msra.mxu0 %v500_v18 }
  0x2b   :  { %464 = vmatprep.subr.bf16.mxu0 %v553_v0 }
  0x2d   :  { %453 = vmatpush3.bf16.msra.mxu1 %v497_v15 }
  0x2e   :  { %465 = vmatpush3.bf16.msra.mxu0 %v501_v19 }
  0x2f   :  { %466 = vmatprep.subr.bf16.mxu0 %v553_v0 }
  0x32   :  { %467 = vmatpush3.bf16.msra.mxu0 %v502_v20 }
  0x33   :  { %468 = vmatprep.subr.bf16.mxu0 %v553_v0 }
  0x36   :  { %469 = vmatpush3.bf16.msra.mxu0 %v503_v31 }
  0x37   :  { %470 = vmatprep.subr.bf16.mxu0 %v553_v0 }
  0x3a   :  { %471 = vmatpush3.bf16.msra.mxu0 %v504_v32 }
  0x3b   :  { %472 = vmatprep.subr.bf16.mxu0 %v553_v0 }
  0x3e   :  { %473 = vmatpush3.bf16.msra.mxu0 %v505_v33 }
  0xe0   :  { %v122_v22 = vpop.f32.mrf.mxu0 }
  0xe1   :  { %v123_v24 = vadd.f32 %v379_v21, %v122_v22 }
  0xe2   :  { %v436_v23 = vpop.f32.mrf.mxu0 }
  0xe3   :  { %v129_v28 = vmax.f32 %v123_v24, 0.0 }
  0xe4   :  { %v125_v25 = vpop.f32.mrf.mxu0 }
  0xe5   :  { %v126_v26 = vadd.f32 %v379_v21, %v125_v25 }
  0xe6   :  { %v437_v27 = vpop.f32.mrf.mxu0 }
  0xe7   :  { %v130_v29 = vmax.f32 %v126_v26, 0.0 }
  0xe9   :  { %v131_v30 = vpack.c.bf16 %v130_v29, %v129_v28 }
  0xeb   :  { %455 = vmatmul.mubr.bf16.vlgmr.msra.gmra.mxu1 %v131_v30 }
 0x1ab   :  { %v237_v35 = vpop.f32.mrf.mxu1 }
 0x1ac   :  { %v238_v37 = vadd.f32 %v385_v34, %v237_v35 }
 0x1ad   :  { %v456_v36 = vpop.f32.mrf.mxu1 }
 0x1ae   :  { %v244_v41 = vmax.f32 %v238_v37, 0.0 }
 0x1af   :  { %v240_v38 = vpop.f32.mrf.mxu1 }
 0x1b0   :  { %v241_v39 = vadd.f32 %v385_v34, %v240_v38 }
 0x1b1   :  { %v457_v40 = vpop.f32.mrf.mxu1 }
 0x1b2   :  { %v245_v42 = vmax.f32 %v241_v39, 0.0 }
 0x1b4   :  { %v246_v43 = vpack.c.bf16 %v245_v42, %v244_v41 }
 0x1b6   :  { %475 = vmatmul.mubr.bf16.vlgmr.msra.gmra.mxu0 %v246_v43 }
 0x276   :  { %v352_v45 = vpop.f32.mrf.mxu0 }
 0x277   :  { %v353_v46 = vadd.f32 %v394_v44, %v352_v45 }
 0x278   :  { %v476_v47 = vpop.f32.mrf.mxu0 }
 0x279   :  { %360 = vst.msk [vmem:[#allocation5] sm:$0xff] %vm359_vm2, %v353_v46 }
 0x27a   :  { %v355_v48 = vpop.f32.mrf.mxu0 }
 0x27b   :  { %v356_v49 = vadd.f32 %v394_v44, %v355_v48 }
 0x27c   :  { %v477_v50 = vpop.f32.mrf.mxu0 }
 0x27d   :  { %361 = vst.msk [vmem:[#allocation5 + $0x8] sm:$0xff] %vm359_vm2, %v356_v49 }
 0x27e   :  { %537 = shalt.err (!%p534_p9)
}
 0x27f   :  { %s556_s6 = smov 128   ;;  %s557_s22 = smov 8  }
 0x280   :  { %373 = dma.vmem_to_hbm [thread:$0]  %s368_s21, 256, %s700_s7, [#allocation4], %s556_s6, %s556_s6, %s557_s22  }
 0x281   :  { %548 = dma.done.wait [#allocation4], 256  }
 0x282   :  { %549 = vsyncadd [#allocation4], 4294967040 }
 0x283   :  { %377 = vsyncpa [#allocation3], 1 }
 0x284   :  { %378 = vsyncpa [#allocation4], 1 }

</bundles_post_ra>
